<compile_context>
chip_gen: v7x
topology: tpu7x:2x2x1
jax: 0.10.0
libtpu: 0.0.40
codegen_flags: <defaults>
</compile_context>

<pallas_src>
import functools

import jax
import jax.numpy as jnp
from jax.experimental import pallas as pl
from jax.experimental.pallas import tpu as pltpu


# ----------------------------------------------------------------------------
# Pallas kernel: fused-tap matmul + bias epilogue + per-tap interleaved stores
# ----------------------------------------------------------------------------
def _convT_fused_kernel(x_ref, w_ref, b_ref, o_ref):
    """y = X @ W_all + bias;  o[:, a, :, :] = y[:, a*KWC:(a+1)*KWC]."""
    tr, wpx, cin = x_ref.shape
    _, kh, _, kwcp = o_ref.shape
    x = x_ref[...].reshape(tr * wpx, cin)                              # f32
    y = jnp.dot(x, w_ref[...], preferred_element_type=jnp.float32)     # (tr*wpx, kh*kwcp)
    y = y + b_ref[...]                                                 # fused conv bias
    for a in range(kh):                                                # static unroll
        o_ref[:, a, :, :] = y[:, a * kwcp:(a + 1) * kwcp].reshape(tr, wpx, kwcp)


# ----------------------------------------------------------------------------
# Helpers
# ----------------------------------------------------------------------------
def _round_up(x, m):
    return (x + m - 1) // m * m


def _choose_row_tile(nh, w_px, cin, kh, kwc_pad, vmem_budget=12 << 20):
    """Pick an image-row tile: ~4096 matmul rows per step, >= 2 (even) grid
    steps, and a per-step VMEM footprint under `vmem_budget`."""
    target_rows = 4096
    tr = max(1, target_rows // max(w_px, 1))
    tr = min(tr, nh)
    if nh > 1:
        tr = min(tr, (nh + 1) // 2)          # force a multi-step grid

    def need(t):
        xb = t * w_px * cin * 4
        ob = t * kh * w_px * kwc_pad * 4
        wb = cin * kh * kwc_pad * 4
        return 2 * (xb + ob) + wb            # double-buffered in/out + weights

    while tr > 1 and need(tr) > vmem_budget:
        tr = max(1, tr // 2)

    nh_pad = _round_up(nh, tr)
    steps = nh_pad // tr
    if steps > 1 and steps % 2 == 1:         # even step count -> both v7x cores busy
        nh_pad += tr
    return nh_pad, tr, need(tr)


# ----------------------------------------------------------------------------
# Wrapper
# ----------------------------------------------------------------------------
def conv_transpose2d(x_nchw, weight, bias, stride):
    """PyTorch-compatible ConvTranspose2d (weight: (Cin, Cout, KH, KW), pad=0)."""
    n, cin, h, w = x_nchw.shape
    _, cout, kh, kw = weight.shape

    # NCHW -> NHWC so the contraction dim (Cin) is lane-minor for the matmul.
    # TODO(synk): keep the surrounding model NHWC to drop this layout pass.
    x = jnp.transpose(x_nchw, (0, 2, 3, 1))
    nh = n * h
    x3 = x.reshape(nh, w, cin)

    kwc = kw * cout
    kwc_pad = _round_up(kwc, 128)            # lane-dense per-tap output columns
    khkwc = kh * kwc_pad

    # Fused weight: w_all[ci, a*kwc_pad + b*cout + co] = weight[ci, co, a, b]
    wt = jnp.transpose(weight, (2, 0, 3, 1)).reshape(kh, cin, kwc)
    if kwc_pad != kwc:
        wt = jnp.pad(wt, ((0, 0), (0, 0), (0, kwc_pad - kwc)))
    w_all = jnp.transpose(wt, (1, 0, 2)).reshape(cin, khkwc)

    bt = jnp.tile(bias, kw)
    if kwc_pad != kwc:
        bt = jnp.pad(bt, ((0, kwc_pad - kwc),))
    b_all = jnp.tile(bt, kh).reshape(1, khkwc).astype(jnp.float32)

    nh_pad, tr, need_bytes = _choose_row_tile(nh, w, cin, kh, kwc_pad)
    if nh_pad != nh:
        x3 = jnp.pad(x3, ((0, nh_pad - nh), (0, 0), (0, 0)))

    fuse_bias = (stride == kh and stride == kw)      # non-overlapping taps
    b_used = b_all if fuse_bias else jnp.zeros_like(b_all)

    vmem_limit = int(min(32 * 1024 * 1024, max(8 * 1024 * 1024, 2 * need_bytes)))

    out4 = pl.pallas_call(
        _convT_fused_kernel,
        out_shape=jax.ShapeDtypeStruct((nh_pad, kh, w, kwc_pad), jnp.float32),
        grid=(nh_pad // tr,),
        in_specs=[
            pl.BlockSpec((tr, w, cin), lambda r: (r, 0, 0)),
            pl.BlockSpec((cin, khkwc), lambda r: (0, 0)),
            pl.BlockSpec((1, khkwc), lambda r: (0, 0)),
        ],
        out_specs=pl.BlockSpec((tr, kh, w, kwc_pad), lambda r: (r, 0, 0, 0)),
        compiler_params=pltpu.CompilerParams(
            dimension_semantics=("parallel",),
            vmem_limit_bytes=vmem_limit),
    )(x3.astype(jnp.float32), w_all.astype(jnp.float32), b_used)

    y = out4
    if nh_pad != nh or kwc_pad != kwc:
        y = y[:nh, :, :, :kwc]               # drop padding only if introduced
    y = y.reshape(n, h, kh, w, kw, cout)     # (N, H, KH, W, KW, Cout)

    if fuse_bias:
        # kernel == stride: taps never overlap and the kernel laid them out
        # interleaved -> pure metadata merge, no transpose / scatter.
        out_nhwc = y.reshape(n, h * kh, w * kw, cout)
    else:
        # TODO(synk): overlapping taps (stride != kernel): per-tap matmuls run in
        # Pallas above; the scatter-add placement is still XLA glue.
        hout = (h - 1) * stride + kh
        wout = (w - 1) * stride + kw
        out_nhwc = jnp.zeros((n, hout, wout, cout), jnp.float32)
        for a in range(kh):
            for b in range(kw):
                out_nhwc = out_nhwc.at[:, a:a + (h - 1) * stride + 1:stride,
                                       b:b + (w - 1) * stride + 1:stride, :].add(
                    y[:, :, a, :, b, :])
        out_nhwc = out_nhwc + bias[None, None, None, :]

    # TODO(synk): final NHWC->NCHW pass only exists to match the PyTorch NCHW API.
    return jnp.transpose(out_nhwc, (0, 3, 1, 2))


def upsample_forward(params, x_nchw, *, stride):
    return conv_transpose2d(x_nchw, params['w'], params['b'], stride)


# ----------------------------------------------------------------------------
# Pure-JAX reference (independent placement path, f32 throughout)
# ----------------------------------------------------------------------------
def conv_transpose2d_ref(x_nchw, weight, bias, stride):
    n, cin, h, w = x_nchw.shape
    _, cout, kh, kw = weight.shape
    hout = (h - 1) * stride + kh
    wout = (w - 1) * stride + kw
    out = jnp.zeros((n, cout, hout, wout), jnp.float32)
    for a in range(kh):
        for b in range(kw):
            contrib = jnp.einsum('nchw,cd->ndhw', x_nchw, weight[:, :, a, b],
                                 preferred_element_type=jnp.float32)
            out = out.at[:, :, a:a + (h - 1) * stride + 1:stride,
                         b:b + (w - 1) * stride + 1:stride].add(contrib)
    return out + bias[None, :, None, None]


# ----------------------------------------------------------------------------
# Main
# ----------------------------------------------------------------------------
if __name__ == "__main__":
    key = jax.random.PRNGKey(0)
    kw_key, kb_key, kx_key = jax.random.split(key, 3)

    # Upsample(input_dim=32, output_dim=64, kernel=2, stride=2)
    CIN, COUT, KERNEL, STRIDE = 32, 64, 2, 2
    N, H, W = 2, 16, 16

    fan = CIN * KERNEL * KERNEL
    params = {
        'w': jax.random.normal(kw_key, (CIN, COUT, KERNEL, KERNEL),
                               jnp.float32) / jnp.sqrt(fan),
        'b': jax.random.normal(kb_key, (COUT,), jnp.float32) * 0.05,
    }
    x = jax.random.normal(kx_key, (N, CIN, H, W), jnp.float32)

    fwd = jax.jit(functools.partial(upsample_forward, stride=STRIDE))
    out = fwd(params, x)
    jax.block_until_ready(out)

    assert out.shape == (N, COUT, H * STRIDE, W * STRIDE), out.shape
    assert out.dtype == jnp.float32

    ref = conv_transpose2d_ref(x, params['w'], params['b'], STRIDE)
    assert jnp.allclose(out, ref, rtol=1e-2, atol=1e-2), (
        float(jnp.max(jnp.abs(out - ref))))

    print("KERNEL_OK")
</pallas_src>

<mosaic_0001>
module attributes {stable_mosaic.version = 11 : i64} {
  func.func @_convT_fused_kernel(%arg0: i32, %arg1: memref<16x16x32xf32, #tpu.memory_space<vmem>>, %arg2: memref<32x256xf32, #tpu.memory_space<vmem>>, %arg3: memref<1x256xf32, #tpu.memory_space<vmem>>, %arg4: memref<16x2x16x128xf32, #tpu.memory_space<vmem>>) attributes {dimension_semantics = [#tpu.dimension_semantics<parallel>], iteration_bounds = array<i64: 2>, scalar_prefetch = 0 : i64, scratch_operands = 0 : i64, tpu.core_type = #tpu.core_type<tc>, window_params = [{transform_indices = @transform_0, window_bounds = array<i64: 16, 16, 32>}, {pipeline_mode = #tpu.pipeline_mode<synchronous>, transform_indices = @transform_1, window_bounds = array<i64: 32, 256>}, {pipeline_mode = #tpu.pipeline_mode<synchronous>, transform_indices = @transform_2, window_bounds = array<i64: 1, 256>}, {transform_indices = @transform_3, window_bounds = array<i64: 16, 2, 16, 128>}]} {
    %c0 = arith.constant 0 : index
    %c0_0 = arith.constant 0 : index
    %c0_1 = arith.constant 0 : index
    %0 = vector.load %arg1[%c0, %c0_0, %c0_1] : memref<16x16x32xf32, #tpu.memory_space<vmem>>, vector<16x16x32xf32>
    %1 = vector.shape_cast %0 : vector<16x16x32xf32> to vector<256x32xf32>
    %c0_2 = arith.constant 0 : index
    %c0_3 = arith.constant 0 : index
    %2 = vector.load %arg2[%c0_2, %c0_3] : memref<32x256xf32, #tpu.memory_space<vmem>>, vector<32x256xf32>
    %cst = arith.constant dense<0.000000e+00> : vector<256x256xf32>
    %3 = tpu.matmul %1, %2, %cst {dimension_numbers = #tpu.dot_dimension_numbers<[1], [0], [0], [1], [0, 0, 1, 1], [], []>} : vector<256x32xf32>, vector<32x256xf32>, vector<256x256xf32> -> vector<256x256xf32>
    %c0_4 = arith.constant 0 : index
    %c0_5 = arith.constant 0 : index
    %4 = vector.load %arg3[%c0_4, %c0_5] : memref<1x256xf32, #tpu.memory_space<vmem>>, vector<1x256xf32>
    %5 = vector.broadcast %4 : vector<1x256xf32> to vector<256x256xf32>
    %6 = arith.addf %3, %5 : vector<256x256xf32>
    %7 = vector.extract_strided_slice %6 {offsets = [0, 0], sizes = [256, 128], strides = [1, 1]} : vector<256x256xf32> to vector<256x128xf32>
    %8 = vector.shape_cast %7 : vector<256x128xf32> to vector<16x16x128xf32>
    %c0_6 = arith.constant 0 : index
    %c0_7 = arith.constant 0 : index
    %c0_8 = arith.constant 0 : index
    %c0_9 = arith.constant 0 : index
    %9 = vector.load %arg4[%c0_6, %c0_7, %c0_8, %c0_9] : memref<16x2x16x128xf32, #tpu.memory_space<vmem>>, vector<16x1x16x128xf32>
    %10 = vector.shape_cast %9 : vector<16x1x16x128xf32> to vector<16x16x128xf32>
    %11 = vector.shape_cast %8 : vector<16x16x128xf32> to vector<16x1x16x128xf32>
    tpu.vector_store %arg4[%c0_6, %c0_7, %c0_8, %c0_9], %11 {strides = array<i32>} : memref<16x2x16x128xf32, #tpu.memory_space<vmem>>, vector<16x1x16x128xf32>,
    %12 = vector.extract_strided_slice %6 {offsets = [0, 128], sizes = [256, 128], strides = [1, 1]} : vector<256x256xf32> to vector<256x128xf32>
    %13 = vector.shape_cast %12 : vector<256x128xf32> to vector<16x16x128xf32>
    %c0_10 = arith.constant 0 : index
    %c1 = arith.constant 1 : index
    %c0_11 = arith.constant 0 : index
    %c0_12 = arith.constant 0 : index
    %14 = vector.load %arg4[%c0_10, %c1, %c0_11, %c0_12] : memref<16x2x16x128xf32, #tpu.memory_space<vmem>>, vector<16x1x16x128xf32>
    %15 = vector.shape_cast %14 : vector<16x1x16x128xf32> to vector<16x16x128xf32>
    %16 = vector.shape_cast %13 : vector<16x16x128xf32> to vector<16x1x16x128xf32>
    tpu.vector_store %arg4[%c0_10, %c1, %c0_11, %c0_12], %16 {strides = array<i32>} : memref<16x2x16x128xf32, #tpu.memory_space<vmem>>, vector<16x1x16x128xf32>,
    return
  }
  func.func @transform_0(%arg0: i32) -> (i32, i32, i32) {
    %c0_i32 = arith.constant 0 : i32
    %c0_i32_0 = arith.constant 0 : i32
    %c0_i32_1 = arith.constant 0 : i32
    return %arg0, %c0_i32, %c0_i32_0 : i32, i32, i32
  }
  func.func @transform_1(%arg0: i32) -> (i32, i32) {
    %c0_i32 = arith.constant 0 : i32
    %c0_i32_0 = arith.constant 0 : i32
    %c0_i32_1 = arith.constant 0 : i32
    return %c0_i32, %c0_i32_0 : i32, i32
  }
  func.func @transform_2(%arg0: i32) -> (i32, i32) {
    %c0_i32 = arith.constant 0 : i32
    %c0_i32_0 = arith.constant 0 : i32
    %c0_i32_1 = arith.constant 0 : i32
    return %c0_i32, %c0_i32_0 : i32, i32
  }
  func.func @transform_3(%arg0: i32) -> (i32, i32, i32, i32) {
    %c0_i32 = arith.constant 0 : i32
    %c0_i32_0 = arith.constant 0 : i32
    %c0_i32_1 = arith.constant 0 : i32
    %c0_i32_2 = arith.constant 0 : i32
    return %arg0, %c0_i32, %c0_i32_0, %c0_i32_1 : i32, i32, i32, i32
  }
}

</mosaic_0001>

<bundles_post_ra>
// kernel: tile.12
= control target key start
LH: loop header
LB: loop body
LE: loop exit
PB: predicated region body
PF: predicated region fallthrough
CT: control target
= control target key end

     0   :  { %s22_s0 = inlined_call_operand.vmem [shape: f32[64], index: 0, kind: input, shape index: {}]   ;;  %s23_s1 = inlined_call_operand.vmem [shape: f32[2,64], index: 1, kind: output, shape index: {}]  }
   0x1   :  { %v4_v0 = vld [vmem:[%s22_s0] ss:$0 sm:$0xff] }
   0x2   :  { %5 = vst [vmem:[%s23_s1] sm:$0x3] %v4_v0 }

// kernel: tile.16
= control target key start
LH: loop header
LB: loop body
LE: loop exit
PB: predicated region body
PF: predicated region fallthrough
CT: control target
= control target key end

     0   :  { %s22_s0 = inlined_call_operand.vmem [shape: f32[128], index: 0, kind: input, shape index: {}]   ;;  %s23_s1 = inlined_call_operand.vmem [shape: f32[2,128], index: 1, kind: output, shape index: {}]  }
   0x1   :  { %v4_v0 = vld [vmem:[%s22_s0] ss:$0 sm:$0xff] }
   0x2   :  { %5 = vst [vmem:[%s23_s1] sm:$0x3] %v4_v0 }

// kernel: tile.15
= control target key start
LH: loop header
LB: loop body
LE: loop exit
PB: predicated region body
PF: predicated region fallthrough
CT: control target
= control target key end

     0   :  { %vm7_vm0 = vcmask 523264   ;;  %vm13_vm1 = vcmask 1048064   ;;  %s39_s0 = inlined_call_operand.vmem [shape: f32[2,64], index: 0, kind: input, shape index: {}]   ;;  %s40_s1 = inlined_call_operand.vmem [shape: f32[128], index: 1, kind: output, shape index: {}]  }
   0x1   :  { %v4_v0 = vld [vmem:[%s39_s0] sm:$0x3]  ;;  %s22_s0 = smov 64  }
   0x2   :  { %5 = vst [vmem:[#allocation1] sm:$0x3] %v4_v0 }
   0x9   :  { %v10_v1 = vld [vmem:[#allocation1 + $0x1] sm:$0x1]   ;;  %v6_v2 = vld [vmem:[#allocation1] sm:$0x1]  }
   0xa   :  { %11 = vrot.lane.b32.xlu0 %v10_v1, %s22_s0  ;;  %8 = vst.msk [vmem:[#allocation0] sm:$0x1] %vm7_vm0, %v6_v2  }
  0x7c   :  { %v12_v3 = vpop.permute.xlu0 %11  }
  0x7d   :  { %14 = vst.msk [vmem:[#allocation0] sm:$0x1] %vm13_vm1, %v12_v3  }
  0x84   :  { %v18_v4 = vld [vmem:[#allocation0] sm:$0x1] }
  0x85   :  { %20 = vst [vmem:[%s40_s1] sm:$0x1] %v18_v4 }

// kernel: upsample_forward.1
= control target key start
LH: loop header
LB: loop body
LE: loop exit
PB: predicated region body
PF: predicated region fallthrough
CT: control target
= control target key end

     0   :  { %8 = vsyncpa [#allocation3], 0  ;;  %s1328_s0 = inlined_call_operand.hbm [shape: f32[32,16,32], index: 0, kind: input, shape index: {}]   ;;  %s1329_s1 = inlined_call_operand.vmem [shape: f32[32,256], index: 1, kind: input, shape index: {}]   ;;  %s1330_s2 = inlined_call_operand.vmem [shape: f32[1,256], index: 2, kind: input, shape index: {}]   ;;  %s1331_s3 = inlined_call_operand.vmem [shape: f32[32,2,16,128], index: 3, kind: output, shape index: {}]  }
   0x1   :  { %10 = vsyncpa [#allocation3 + $0x1], 0  ;;  %s962_s12 = smov 0   ;;  %s964_s13 = smov 0  }
   0x2   :  { %s966_s14 = smov 0   ;;  %s968_s15 = smov 0  }
   0x3 LB: > { %s736_s16 = sadd.s32 4294967295, %s936_s15   ;;  %s982_s17 = sadd.s32 1, %s936_s15   ;;  %s936_s15 = sphi %s968_s15, %s1338_s15   ;;  %s932_s14 = sphi %s966_s14, %s1337_s14   ;;  %s928_s13 = sphi %s964_s13, %s1336_s13   ;;  %s924_s12 = sphi %s962_s12, %s1335_s12  }
   0x4   : > { %s20_s18 = ssub.s32 %s936_s15, %s982_s17  ;;  %s23_s19 = sadd.s32 1, %s932_s14 }
   0x5   : > { %p21_p0 = scmp.eq.s32.totalorder %s20_s18, 0  ;;  %p30_p1 = scmp.ne.s32.totalorder %s932_s14, %s928_s13 }
   0x6   : > { %p31_p2 = scmp.eq.s32.totalorder %s936_s15, 0  ;;  %p36_p3 = scmp.ne.s32.totalorder %s928_s13, %s924_s12 }
   0x7   : > { %s992_s20 = scalar_select %p21_p0, %s932_s14, %s23_s19  }
   0x8   : > { %p32_p4 = por %p31_p2, %p30_p1  ;;  %p37_p5 = scmp.eq.s32.totalorder %s736_s16, 0 }
   0x9   : > { %p836_p6 = scmp.lt.s32.totalorder %s936_s15, 2  ;;  %s134_s22 = sand.u32 1, %s932_s14  }
   0xa   : > { %p997_p7 = por %p37_p5, %p36_p3  ;;  %s740_s23 = sshll.u32 %s134_s22, 8 }
   0xb   : > { %s816_s24 = sshll.u32 %s936_s15, 12  ;;  %s138_s28 = scalar_lea.vmem [#allocation2], %s740_s23 }
   0xc   : > { %s1006_s27 = scalar_lea.hbm %s1328_s0, %s816_s24  ;;  %s146_s29 = sshll.u32 %s138_s28, 4  ;;  %s1008_s29 = int_to_ptr.vmem [resolvable:$true] %s146_s29 }
   0xd   : > { %p1010_p8 = pnand %p836_p6, %p32_p4  ;;  %s1015_s4 = scalar_lea.sflag [#allocation3], %s134_s22 }
   0xe   : > { %s872_s5 = scalar_lea.hbm %s1006_s27, 4096  ;;  %s877_s8 = scalar_lea.hbm %s1328_s0, 8192 }
   0xf   : > { %p873_p10 = scmp.ne.s32.totalorder %s1006_s27, %s872_s5  ;;  %p874_p11 = pneg %p1010_p8 }
  0x10   : > { %p878_p0 = scmp.lt.u32.totalorder %s1006_s27, %s1328_s0  ;;  %p879_p1 = scmp.lt.u32.totalorder %s877_s8, %s872_s5 }
  0x11   : > { %p875_p12 = pnand %p874_p11, %p873_p10  ;;  %p881_p3 = scmp.lt.u32.totalorder %s872_s5, %s1006_s27 }
  0x12   : > { %p880_p2 = por %p879_p1, %p878_p0 }
  0x13   : > { %p876_p13 = pneg %p875_p12 }
  0x14   : > { %p882_p4 = por %p881_p3, %p880_p2 }
  0x16   : > { %p883_p5 = pnand %p882_p4, %p876_p13 }
  0x18   : > { %886 = shalt.err (!%p883_p5)
}
  0x19   : > { %s887_s11 = scalar_lea.vmem %s1008_s29, 4096  ;;  %s938_s12 = smov [#allocation2]  }
  0x1a   : > { %p888_p6 = scmp.ne.s32.totalorder %s1008_s29, %s887_s11  ;;  %s892_s18 = sshll.u32 %s938_s12, 4  ;;  %s893_s18 = int_to_ptr.vmem [resolvable:$false] %s892_s18 }
  0x1b   : > { %s894_s19 = scalar_lea.vmem %s893_s18, 8192  ;;  %p895_p9 = scmp.lt.s32.totalorder %s1008_s29, %s893_s18 }
  0x1c   : > { %p890_p10 = pnand %p888_p6, %p874_p11  ;;  %p896_p0 = scmp.lt.s32.totalorder %s894_s19, %s887_s11 }
  0x1e   : > { %p891_p12 = pneg %p890_p10  ;;  %p897_p1 = por %p896_p0, %p895_p9 }
  0x20   : > { %p898_p2 = pnand %p897_p1, %p891_p12 }
  0x22   : > { %901 = shalt.err (!%p898_p2)
}
  0x23   : > { %s939_s22 = smov 128   ;;  %s940_s23 = smov 8  }
  0x24   : > { %835 = dma.hbm_to_vmem [thread:$0]  (!%p1010_p8), %s1006_s27, 4096, %s1008_s29, %s1015_s4, %s939_s22, %s939_s22, %s940_s23  }
  0x25   : > { %p154_p11 = scmp.lt.s32.totalorder %s936_s15, 3  ;;  %p1334_p13 = scmp.ge.s32.totalorder %s936_s15, 1 }
  0x27   : > { %p155_p3 = pnand %p1334_p13, %p154_p11 }
  0x28   : > { %s160_s24 = sand.u32 (!%p155_p3), 1, %s928_s13  }
  0x29   : > { %158 = sbr.rel (%p155_p3) target bundleno = 336 (0x150), region = 32  ;;  %s745_s25 = sshll.u32 (!%p155_p3), %s160_s24, 8 }
  0x2a   : > { %s161_s26 = scalar_lea.sflag (!%p155_p3), [#allocation3], %s160_s24  ;;  %s1047_s28 = scalar_lea.vmem (!%p155_p3), [#allocation2], %s745_s25 }
  0x30   : > { %919 = dma.done.wait (%p997_p7), %s161_s26, 4096  }
  0x31   : > { %921 = vsyncadd (%p997_p7), %s161_s26, 4294963200  ;;  %v941_v0 = vmov 0.0   ;;  %v229_v1 = vld [vmem:[%s1329_s1 + $0x8] sm:$0xff]  ;;  %v231_v2 = vld [vmem:[%s1329_s1 + $0x18] sm:$0xff]  ;;  %vm248_vm0 = vcmask 261120   ;;  %v238_v45 = vlaneseq  ;;  %s746_s23 = sshll.u32 %s736_s16, 4 }
  0x32   : > { %409 = vmatprep.mubr.f32.mxu0 %v941_v0  ;;  %505 = vmatprep.mubr.f32.mxu1 %v941_v0  ;;  %v228_v3 = vld [vmem:[%s1329_s1] sm:$0xff]  ;;  %v818_v4 = vpack.c.bf16 %v231_v2, %v229_v1  ;;  %v230_v5 = vld [vmem:[%s1329_s1 + $0x10] sm:$0xff]  ;;  %v233_v6 = vld [vmem:[%s1329_s1 + $0x28] sm:$0xff]  ;;  %p190_p7 = scmp.lt.s32.totalorder %s746_s23, 31 }
  0x33   : > { %v235_v7 = vld [vmem:[%s1329_s1 + $0x38] sm:$0xff]  ;;  %v820_v8 = vpack.c.bf16 %v230_v5, %v228_v3  ;;  %v232_v10 = vld [vmem:[%s1329_s1 + $0x20] sm:$0xff]  ;;  %v234_v11 = vld [vmem:[%s1329_s1 + $0x30] sm:$0xff]  ;;  %v239_v46 = vshrl.u32 %v238_v45, 7 }
  0x34   : > { %v822_v9 = vpack.c.bf16 %v235_v7, %v233_v6  ;;  %819 = vmatprep.subr.bf16.mxu0 %v818_v4  ;;  %826 = vmatprep.subr.bf16.mxu1 %v818_v4  ;;  %v824_v12 = vpack.c.bf16 %v234_v11, %v232_v10  ;;  %v196_v13 = vld [vmem:[%s1047_s28] sm:$0xff]  ;;  %v197_v15 = vld [vmem:[%s1047_s28 + $0x8] sm:$0xff]  ;;  %v198_v17 = vld [vmem:[%s1047_s28 + $0x10] sm:$0xff]  ;;  %s1340_s23 = smov (!%p190_p7, %s746_s23), 31 }
  0x35   : > { %821 = vmatpush1.bf16.msra.mxu0 %v820_v8  ;;  %828 = vmatpush1.bf16.msra.mxu1 %v820_v8  ;;  %v212_v14 = vld [vmem:[%s1047_s28 + $0x80] sm:$0xff]  ;;  %v213_v16 = vld [vmem:[%s1047_s28 + $0x88] sm:$0xff]  ;;  %v214_v18 = vld [vmem:[%s1047_s28 + $0x90] sm:$0xff]  ;;  %v240_v47 = vsub.s32 0, %v239_v46  ;;  %v244_v49 = vsub.s32 1, %v239_v46  ;;  %s817_s26 = sshll.u32 %s1340_s23, 5 }
  0x36   : > { %823 = vmatprep.subr.bf16.mxu0 %v822_v9  ;;  %827 = vmatprep.subr.bf16.mxu1 %v822_v9  ;;  %v199_v19 = vld [vmem:[%s1047_s28 + $0x18] sm:$0xff]  ;;  %v200_v21 = vld [vmem:[%s1047_s28 + $0x20] sm:$0xff]  ;;  %v201_v23 = vld [vmem:[%s1047_s28 + $0x28] sm:$0xff]  ;;  %s1185_s29 = scalar_lea.vmem %s1331_s3, %s817_s26 }
  0x37   : > { %v215_v20 = vld [vmem:[%s1047_s28 + $0x98] sm:$0xff]  ;;  %v216_v22 = vld [vmem:[%s1047_s28 + $0xa0] sm:$0xff]  ;;  %v217_v24 = vld [vmem:[%s1047_s28 + $0xa8] sm:$0xff] }
  0x38   : > { %v202_v25 = vld [vmem:[%s1047_s28 + $0x30] sm:$0xff]  ;;  %v203_v27 = vld [vmem:[%s1047_s28 + $0x38] sm:$0xff]  ;;  %v204_v29 = vld [vmem:[%s1047_s28 + $0x40] sm:$0xff] }
  0x39   : > { %825 = vmatpush1.bf16.msra.mxu0 %v824_v12  ;;  %829 = vmatpush1.bf16.msra.mxu1 %v824_v12  ;;  %v218_v26 = vld [vmem:[%s1047_s28 + $0xb0] sm:$0xff]  ;;  %v219_v28 = vld [vmem:[%s1047_s28 + $0xb8] sm:$0xff]  ;;  %v220_v30 = vld [vmem:[%s1047_s28 + $0xc0] sm:$0xff] }
  0x3a   : > { %v205_v31 = vld [vmem:[%s1047_s28 + $0x48] sm:$0xff]  ;;  %v206_v33 = vld [vmem:[%s1047_s28 + $0x50] sm:$0xff]  ;;  %v207_v35 = vld [vmem:[%s1047_s28 + $0x58] sm:$0xff] }
  0x3b   : > { %v221_v32 = vld [vmem:[%s1047_s28 + $0xc8] sm:$0xff]  ;;  %v222_v34 = vld [vmem:[%s1047_s28 + $0xd0] sm:$0xff]  ;;  %v223_v36 = vld [vmem:[%s1047_s28 + $0xd8] sm:$0xff] }
  0x3c   : > { %749 = vmatmul.mubr.msk.f32.vlgmr.msra.gmra.mrb[0].mxu0 %vm248_vm0, %v196_v13  ;;  %765 = vmatmul.mubr.msk.f32.vlgmr.msra.gmra.mrb[0].mxu1 %vm248_vm0, %v212_v14  ;;  %v208_v37 = vld [vmem:[%s1047_s28 + $0x60] sm:$0xff]  ;;  %v209_v39 = vld [vmem:[%s1047_s28 + $0x68] sm:$0xff]  ;;  %v210_v41 = vld [vmem:[%s1047_s28 + $0x70] sm:$0xff] }
  0x3d   : > { %415 = vmatprep.mubr.f32.mxu0 %v941_v0  ;;  %511 = vmatprep.mubr.f32.mxu1 %v941_v0  ;;  %v224_v38 = vld [vmem:[%s1047_s28 + $0xe0] sm:$0xff]  ;;  %v225_v40 = vld [vmem:[%s1047_s28 + $0xe8] sm:$0xff]  ;;  %v226_v42 = vld [vmem:[%s1047_s28 + $0xf0] sm:$0xff] }
  0x3e   : > { %v211_v43 = vld [vmem:[%s1047_s28 + $0x78] sm:$0xff]  ;;  %v236_v48 = vld [vmem:[%s1330_s2] sm:$0x3] }
  0x3f   : > { %v227_v44 = vld [vmem:[%s1047_s28 + $0xf8] sm:$0xff]  ;;  %v1178_v50 = vrot.slane %v236_v48, %v240_v47  ;;  %v1180_v51 = vrot.slane %v236_v48, %v244_v49 }
  0x40   : > { %750 = vmatmul.mubr.msk.f32.gmra.mrb[2].mxu0 %vm248_vm0, %v197_v15  ;;  %766 = vmatmul.mubr.msk.f32.gmra.mrb[2].mxu1 %vm248_vm0, %v213_v16 }
  0x41   : > { %421 = vmatprep.mubr.f32.mxu0 %v941_v0  ;;  %517 = vmatprep.mubr.f32.mxu1 %v941_v0 }
  0x44   : > { %751 = vmatmul.mubr.msk.f32.gmra.mrb[4].mxu0 %vm248_vm0, %v198_v17  ;;  %767 = vmatmul.mubr.msk.f32.gmra.mrb[4].mxu1 %vm248_vm0, %v214_v18 }
  0x45   : > { %427 = vmatprep.mubr.f32.mxu0 %v941_v0  ;;  %523 = vmatprep.mubr.f32.mxu1 %v941_v0 }
  0x48   : > { %752 = vmatmul.mubr.msk.f32.gmra.mrb[6].mxu0 %vm248_vm0, %v199_v19  ;;  %768 = vmatmul.mubr.msk.f32.gmra.mrb[6].mxu1 %vm248_vm0, %v215_v20 }
  0x49   : > { %433 = vmatprep.mubr.f32.mxu0 %v941_v0  ;;  %529 = vmatprep.mubr.f32.mxu1 %v941_v0 }
  0x4c   : > { %753 = vmatmul.mubr.msk.f32.gmra.mrb[8].mxu0 %vm248_vm0, %v200_v21  ;;  %769 = vmatmul.mubr.msk.f32.gmra.mrb[8].mxu1 %vm248_vm0, %v216_v22 }
  0x4d   : > { %439 = vmatprep.mubr.f32.mxu0 %v941_v0  ;;  %535 = vmatprep.mubr.f32.mxu1 %v941_v0 }
  0x50   : > { %754 = vmatmul.mubr.msk.f32.gmra.mrb[10].mxu0 %vm248_vm0, %v201_v23  ;;  %770 = vmatmul.mubr.msk.f32.gmra.mrb[10].mxu1 %vm248_vm0, %v217_v24 }
  0x51   : > { %445 = vmatprep.mubr.f32.mxu0 %v941_v0  ;;  %541 = vmatprep.mubr.f32.mxu1 %v941_v0 }
  0x54   : > { %755 = vmatmul.mubr.msk.f32.gmra.mrb[12].mxu0 %vm248_vm0, %v202_v25  ;;  %771 = vmatmul.mubr.msk.f32.gmra.mrb[12].mxu1 %vm248_vm0, %v218_v26 }
  0x55   : > { %451 = vmatprep.mubr.f32.mxu0 %v941_v0  ;;  %547 = vmatprep.mubr.f32.mxu1 %v941_v0 }
  0x58   : > { %756 = vmatmul.mubr.msk.f32.gmra.mrb[14].mxu0 %vm248_vm0, %v203_v27  ;;  %772 = vmatmul.mubr.msk.f32.gmra.mrb[14].mxu1 %vm248_vm0, %v219_v28 }
  0x59   : > { %457 = vmatprep.mubr.f32.mxu0 %v941_v0  ;;  %553 = vmatprep.mubr.f32.mxu1 %v941_v0 }
  0x5c   : > { %757 = vmatmul.mubr.msk.f32.gmra.mrb[16].mxu0 %vm248_vm0, %v204_v29  ;;  %773 = vmatmul.mubr.msk.f32.gmra.mrb[16].mxu1 %vm248_vm0, %v220_v30 }
  0x5d   : > { %463 = vmatprep.mubr.f32.mxu0 %v941_v0  ;;  %559 = vmatprep.mubr.f32.mxu1 %v941_v0 }
  0x60   : > { %758 = vmatmul.mubr.msk.f32.gmra.mrb[18].mxu0 %vm248_vm0, %v205_v31  ;;  %774 = vmatmul.mubr.msk.f32.gmra.mrb[18].mxu1 %vm248_vm0, %v221_v32 }
  0x61   : > { %469 = vmatprep.mubr.f32.mxu0 %v941_v0  ;;  %565 = vmatprep.mubr.f32.mxu1 %v941_v0 }
  0x64   : > { %759 = vmatmul.mubr.msk.f32.gmra.mrb[20].mxu0 %vm248_vm0, %v206_v33  ;;  %775 = vmatmul.mubr.msk.f32.gmra.mrb[20].mxu1 %vm248_vm0, %v222_v34 }
  0x65   : > { %475 = vmatprep.mubr.f32.mxu0 %v941_v0  ;;  %571 = vmatprep.mubr.f32.mxu1 %v941_v0 }
  0x68   : > { %760 = vmatmul.mubr.msk.f32.gmra.mrb[22].mxu0 %vm248_vm0, %v207_v35  ;;  %776 = vmatmul.mubr.msk.f32.gmra.mrb[22].mxu1 %vm248_vm0, %v223_v36 }
  0x69   : > { %481 = vmatprep.mubr.f32.mxu0 %v941_v0  ;;  %577 = vmatprep.mubr.f32.mxu1 %v941_v0 }
  0x6c   : > { %761 = vmatmul.mubr.msk.f32.gmra.mrb[24].mxu0 %vm248_vm0, %v208_v37  ;;  %777 = vmatmul.mubr.msk.f32.gmra.mrb[24].mxu1 %vm248_vm0, %v224_v38 }
  0x6d   : > { %487 = vmatprep.mubr.f32.mxu0 %v941_v0  ;;  %583 = vmatprep.mubr.f32.mxu1 %v941_v0 }
  0x70   : > { %762 = vmatmul.mubr.msk.f32.gmra.mrb[26].mxu0 %vm248_vm0, %v209_v39  ;;  %778 = vmatmul.mubr.msk.f32.gmra.mrb[26].mxu1 %vm248_vm0, %v225_v40 }
  0x71   : > { %493 = vmatprep.mubr.f32.mxu0 %v941_v0  ;;  %589 = vmatprep.mubr.f32.mxu1 %v941_v0 }
  0x74   : > { %763 = vmatmul.mubr.msk.f32.gmra.mrb[28].mxu0 %vm248_vm0, %v210_v41  ;;  %779 = vmatmul.mubr.msk.f32.gmra.mrb[28].mxu1 %vm248_vm0, %v226_v42 }
  0x75   : > { %499 = vmatprep.mubr.f32.mxu0 %v941_v0  ;;  %595 = vmatprep.mubr.f32.mxu1 %v941_v0 }
  0x78   : > { %764 = vmatmul.mubr.msk.f32.gmra.mrb[30].mxu0 %vm248_vm0, %v211_v43  ;;  %780 = vmatmul.mubr.msk.f32.gmra.mrb[30].mxu1 %vm248_vm0, %v227_v44 }
 0x10f   : > { %v411_v52 = vpop.f32.mrb[0].mxu0  ;;  %v507_v53 = vpop.f32.mrb[0].mxu1 }
 0x110   : > { %v412_v54 = vadd.f32 %v411_v52, %v1178_v50  ;;  %v508_v55 = vadd.f32 %v507_v53, %v1178_v50  ;;  %v413_v56 = vpop.f32.mrb[1].mxu0  ;;  %v509_v57 = vpop.f32.mrb[1].mxu1 }
 0x111   : > { %v414_v58 = vadd.f32 %v413_v56, %v1180_v51  ;;  %v510_v59 = vadd.f32 %v509_v57, %v1180_v51 }
 0x112   : > { %602 = vst [vmem:[%s1185_s29] sm:$0xff] %v412_v54  ;;  %618 = vst [vmem:[%s1185_s29 + $0x100] sm:$0xff] %v508_v55 }
 0x113   : > { %781 = vst [vmem:[%s1185_s29 + $0x10] sm:$0xff] %v414_v58  ;;  %797 = vst [vmem:[%s1185_s29 + $0x110] sm:$0xff] %v510_v59  ;;  %v417_v60 = vpop.f32.mrb[2].mxu0  ;;  %v513_v61 = vpop.f32.mrb[2].mxu1 }
 0x114   : > { %v418_v62 = vadd.f32 %v417_v60, %v1178_v50  ;;  %v514_v63 = vadd.f32 %v513_v61, %v1178_v50  ;;  %v419_v0 = vpop.f32.mrb[3].mxu0  ;;  %v515_v1 = vpop.f32.mrb[3].mxu1 }
 0x115   : > { %v420_v2 = vadd.f32 %v419_v0, %v1180_v51  ;;  %v516_v3 = vadd.f32 %v515_v1, %v1180_v51 }
 0x116   : > { %603 = vst [vmem:[%s1185_s29 + $0x8] sm:$0xff] %v418_v62  ;;  %619 = vst [vmem:[%s1185_s29 + $0x108] sm:$0xff] %v514_v63 }
 0x117   : > { %782 = vst [vmem:[%s1185_s29 + $0x18] sm:$0xff] %v420_v2  ;;  %798 = vst [vmem:[%s1185_s29 + $0x118] sm:$0xff] %v516_v3  ;;  %v423_v4 = vpop.f32.mrb[4].mxu0  ;;  %v519_v5 = vpop.f32.mrb[4].mxu1 }
 0x118   : > { %v424_v6 = vadd.f32 %v423_v4, %v1178_v50  ;;  %v520_v7 = vadd.f32 %v519_v5, %v1178_v50  ;;  %v425_v8 = vpop.f32.mrb[5].mxu0  ;;  %v521_v9 = vpop.f32.mrb[5].mxu1 }
 0x119   : > { %v426_v10 = vadd.f32 %v425_v8, %v1180_v51  ;;  %v522_v11 = vadd.f32 %v521_v9, %v1180_v51 }
 0x11a   : > { %604 = vst [vmem:[%s1185_s29 + $0x20] sm:$0xff] %v424_v6  ;;  %620 = vst [vmem:[%s1185_s29 + $0x120] sm:$0xff] %v520_v7 }
 0x11b   : > { %783 = vst [vmem:[%s1185_s29 + $0x30] sm:$0xff] %v426_v10  ;;  %799 = vst [vmem:[%s1185_s29 + $0x130] sm:$0xff] %v522_v11  ;;  %v429_v12 = vpop.f32.mrb[6].mxu0  ;;  %v525_v13 = vpop.f32.mrb[6].mxu1 }
 0x11c   : > { %v430_v14 = vadd.f32 %v429_v12, %v1178_v50  ;;  %v526_v15 = vadd.f32 %v525_v13, %v1178_v50  ;;  %v431_v16 = vpop.f32.mrb[7].mxu0  ;;  %v527_v17 = vpop.f32.mrb[7].mxu1 }
 0x11d   : > { %v432_v18 = vadd.f32 %v431_v16, %v1180_v51  ;;  %v528_v19 = vadd.f32 %v527_v17, %v1180_v51 }
 0x11e   : > { %605 = vst [vmem:[%s1185_s29 + $0x28] sm:$0xff] %v430_v14  ;;  %621 = vst [vmem:[%s1185_s29 + $0x128] sm:$0xff] %v526_v15 }
 0x11f   : > { %784 = vst [vmem:[%s1185_s29 + $0x38] sm:$0xff] %v432_v18  ;;  %800 = vst [vmem:[%s1185_s29 + $0x138] sm:$0xff] %v528_v19  ;;  %v435_v20 = vpop.f32.mrb[8].mxu0  ;;  %v531_v21 = vpop.f32.mrb[8].mxu1 }
 0x120   : > { %v436_v22 = vadd.f32 %v435_v20, %v1178_v50  ;;  %v532_v23 = vadd.f32 %v531_v21, %v1178_v50  ;;  %v437_v24 = vpop.f32.mrb[9].mxu0  ;;  %v533_v25 = vpop.f32.mrb[9].mxu1 }
 0x121   : > { %v438_v26 = vadd.f32 %v437_v24, %v1180_v51  ;;  %v534_v27 = vadd.f32 %v533_v25, %v1180_v51 }
 0x122   : > { %606 = vst [vmem:[%s1185_s29 + $0x40] sm:$0xff] %v436_v22  ;;  %622 = vst [vmem:[%s1185_s29 + $0x140] sm:$0xff] %v532_v23 }
 0x123   : > { %785 = vst [vmem:[%s1185_s29 + $0x50] sm:$0xff] %v438_v26  ;;  %801 = vst [vmem:[%s1185_s29 + $0x150] sm:$0xff] %v534_v27  ;;  %v441_v28 = vpop.f32.mrb[10].mxu0  ;;  %v537_v29 = vpop.f32.mrb[10].mxu1 }
 0x124   : > { %v442_v30 = vadd.f32 %v441_v28, %v1178_v50  ;;  %v538_v31 = vadd.f32 %v537_v29, %v1178_v50  ;;  %v443_v32 = vpop.f32.mrb[11].mxu0  ;;  %v539_v33 = vpop.f32.mrb[11].mxu1 }
 0x125   : > { %v444_v34 = vadd.f32 %v443_v32, %v1180_v51  ;;  %v540_v35 = vadd.f32 %v539_v33, %v1180_v51 }
 0x126   : > { %607 = vst [vmem:[%s1185_s29 + $0x48] sm:$0xff] %v442_v30  ;;  %623 = vst [vmem:[%s1185_s29 + $0x148] sm:$0xff] %v538_v31 }
 0x127   : > { %786 = vst [vmem:[%s1185_s29 + $0x58] sm:$0xff] %v444_v34  ;;  %802 = vst [vmem:[%s1185_s29 + $0x158] sm:$0xff] %v540_v35  ;;  %v447_v36 = vpop.f32.mrb[12].mxu0  ;;  %v543_v37 = vpop.f32.mrb[12].mxu1 }
 0x128   : > { %v448_v38 = vadd.f32 %v447_v36, %v1178_v50  ;;  %v544_v39 = vadd.f32 %v543_v37, %v1178_v50  ;;  %v449_v40 = vpop.f32.mrb[13].mxu0  ;;  %v545_v41 = vpop.f32.mrb[13].mxu1 }
 0x129   : > { %v450_v42 = vadd.f32 %v449_v40, %v1180_v51  ;;  %v546_v43 = vadd.f32 %v545_v41, %v1180_v51 }
 0x12a   : > { %608 = vst [vmem:[%s1185_s29 + $0x60] sm:$0xff] %v448_v38  ;;  %624 = vst [vmem:[%s1185_s29 + $0x160] sm:$0xff] %v544_v39 }
 0x12b   : > { %787 = vst [vmem:[%s1185_s29 + $0x70] sm:$0xff] %v450_v42  ;;  %803 = vst [vmem:[%s1185_s29 + $0x170] sm:$0xff] %v546_v43  ;;  %v453_v44 = vpop.f32.mrb[14].mxu0  ;;  %v549_v45 = vpop.f32.mrb[14].mxu1 }
 0x12c   : > { %v454_v46 = vadd.f32 %v453_v44, %v1178_v50  ;;  %v550_v47 = vadd.f32 %v549_v45, %v1178_v50  ;;  %v455_v48 = vpop.f32.mrb[15].mxu0  ;;  %v551_v49 = vpop.f32.mrb[15].mxu1 }
 0x12d   : > { %v456_v52 = vadd.f32 %v455_v48, %v1180_v51  ;;  %v552_v53 = vadd.f32 %v551_v49, %v1180_v51 }
 0x12e   : > { %609 = vst [vmem:[%s1185_s29 + $0x68] sm:$0xff] %v454_v46  ;;  %625 = vst [vmem:[%s1185_s29 + $0x168] sm:$0xff] %v550_v47 }
 0x12f   : > { %788 = vst [vmem:[%s1185_s29 + $0x78] sm:$0xff] %v456_v52  ;;  %804 = vst [vmem:[%s1185_s29 + $0x178] sm:$0xff] %v552_v53  ;;  %v459_v54 = vpop.f32.mrb[16].mxu0  ;;  %v555_v55 = vpop.f32.mrb[16].mxu1 }
 0x130   : > { %v460_v56 = vadd.f32 %v459_v54, %v1178_v50  ;;  %v556_v57 = vadd.f32 %v555_v55, %v1178_v50  ;;  %v461_v58 = vpop.f32.mrb[17].mxu0  ;;  %v557_v59 = vpop.f32.mrb[17].mxu1 }
 0x131   : > { %v462_v60 = vadd.f32 %v461_v58, %v1180_v51  ;;  %v558_v61 = vadd.f32 %v557_v59, %v1180_v51 }
 0x132   : > { %610 = vst [vmem:[%s1185_s29 + $0x80] sm:$0xff] %v460_v56  ;;  %626 = vst [vmem:[%s1185_s29 + $0x180] sm:$0xff] %v556_v57 }
 0x133   : > { %789 = vst [vmem:[%s1185_s29 + $0x90] sm:$0xff] %v462_v60  ;;  %805 = vst [vmem:[%s1185_s29 + $0x190] sm:$0xff] %v558_v61  ;;  %v465_v62 = vpop.f32.mrb[18].mxu0  ;;  %v561_v63 = vpop.f32.mrb[18].mxu1 }
 0x134   : > { %v466_v0 = vadd.f32 %v465_v62, %v1178_v50  ;;  %v562_v1 = vadd.f32 %v561_v63, %v1178_v50  ;;  %v467_v2 = vpop.f32.mrb[19].mxu0  ;;  %v563_v3 = vpop.f32.mrb[19].mxu1 }
 0x135   : > { %v468_v4 = vadd.f32 %v467_v2, %v1180_v51  ;;  %v564_v5 = vadd.f32 %v563_v3, %v1180_v51 }
 0x136   : > { %611 = vst [vmem:[%s1185_s29 + $0x88] sm:$0xff] %v466_v0  ;;  %627 = vst [vmem:[%s1185_s29 + $0x188] sm:$0xff] %v562_v1 }
 0x137   : > { %790 = vst [vmem:[%s1185_s29 + $0x98] sm:$0xff] %v468_v4  ;;  %806 = vst [vmem:[%s1185_s29 + $0x198] sm:$0xff] %v564_v5  ;;  %v471_v6 = vpop.f32.mrb[20].mxu0  ;;  %v567_v7 = vpop.f32.mrb[20].mxu1 }
 0x138   : > { %v472_v8 = vadd.f32 %v471_v6, %v1178_v50  ;;  %v568_v9 = vadd.f32 %v567_v7, %v1178_v50  ;;  %v473_v10 = vpop.f32.mrb[21].mxu0  ;;  %v569_v11 = vpop.f32.mrb[21].mxu1 }
 0x139   : > { %v474_v12 = vadd.f32 %v473_v10, %v1180_v51  ;;  %v570_v13 = vadd.f32 %v569_v11, %v1180_v51 }
 0x13a   : > { %612 = vst [vmem:[%s1185_s29 + $0xa0] sm:$0xff] %v472_v8  ;;  %628 = vst [vmem:[%s1185_s29 + $0x1a0] sm:$0xff] %v568_v9 }
 0x13b   : > { %791 = vst [vmem:[%s1185_s29 + $0xb0] sm:$0xff] %v474_v12  ;;  %807 = vst [vmem:[%s1185_s29 + $0x1b0] sm:$0xff] %v570_v13  ;;  %v477_v14 = vpop.f32.mrb[22].mxu0  ;;  %v573_v15 = vpop.f32.mrb[22].mxu1 }
 0x13c   : > { %v478_v16 = vadd.f32 %v477_v14, %v1178_v50  ;;  %v574_v17 = vadd.f32 %v573_v15, %v1178_v50  ;;  %v479_v18 = vpop.f32.mrb[23].mxu0  ;;  %v575_v19 = vpop.f32.mrb[23].mxu1 }
 0x13d   : > { %v480_v20 = vadd.f32 %v479_v18, %v1180_v51  ;;  %v576_v21 = vadd.f32 %v575_v19, %v1180_v51 }
 0x13e   : > { %613 = vst [vmem:[%s1185_s29 + $0xa8] sm:$0xff] %v478_v16  ;;  %629 = vst [vmem:[%s1185_s29 + $0x1a8] sm:$0xff] %v574_v17 }
 0x13f   : > { %792 = vst [vmem:[%s1185_s29 + $0xb8] sm:$0xff] %v480_v20  ;;  %808 = vst [vmem:[%s1185_s29 + $0x1b8] sm:$0xff] %v576_v21  ;;  %v483_v22 = vpop.f32.mrb[24].mxu0  ;;  %v579_v23 = vpop.f32.mrb[24].mxu1 }
 0x140   : > { %v484_v24 = vadd.f32 %v483_v22, %v1178_v50  ;;  %v580_v25 = vadd.f32 %v579_v23, %v1178_v50  ;;  %v485_v26 = vpop.f32.mrb[25].mxu0  ;;  %v581_v27 = vpop.f32.mrb[25].mxu1 }
 0x141   : > { %v486_v28 = vadd.f32 %v485_v26, %v1180_v51  ;;  %v582_v29 = vadd.f32 %v581_v27, %v1180_v51 }
 0x142   : > { %614 = vst [vmem:[%s1185_s29 + $0xc0] sm:$0xff] %v484_v24  ;;  %630 = vst [vmem:[%s1185_s29 + $0x1c0] sm:$0xff] %v580_v25 }
 0x143   : > { %793 = vst [vmem:[%s1185_s29 + $0xd0] sm:$0xff] %v486_v28  ;;  %809 = vst [vmem:[%s1185_s29 + $0x1d0] sm:$0xff] %v582_v29  ;;  %v489_v30 = vpop.f32.mrb[26].mxu0  ;;  %v585_v31 = vpop.f32.mrb[26].mxu1 }
 0x144   : > { %v490_v32 = vadd.f32 %v489_v30, %v1178_v50  ;;  %v586_v33 = vadd.f32 %v585_v31, %v1178_v50  ;;  %v491_v34 = vpop.f32.mrb[27].mxu0  ;;  %v587_v35 = vpop.f32.mrb[27].mxu1 }
 0x145   : > { %v492_v36 = vadd.f32 %v491_v34, %v1180_v51  ;;  %v588_v37 = vadd.f32 %v587_v35, %v1180_v51 }
 0x146   : > { %615 = vst [vmem:[%s1185_s29 + $0xc8] sm:$0xff] %v490_v32  ;;  %631 = vst [vmem:[%s1185_s29 + $0x1c8] sm:$0xff] %v586_v33 }
 0x147   : > { %794 = vst [vmem:[%s1185_s29 + $0xd8] sm:$0xff] %v492_v36  ;;  %810 = vst [vmem:[%s1185_s29 + $0x1d8] sm:$0xff] %v588_v37  ;;  %v495_v38 = vpop.f32.mrb[28].mxu0  ;;  %v591_v39 = vpop.f32.mrb[28].mxu1 }
 0x148   : > { %v496_v40 = vadd.f32 %v495_v38, %v1178_v50  ;;  %v592_v41 = vadd.f32 %v591_v39, %v1178_v50  ;;  %v497_v42 = vpop.f32.mrb[29].mxu0  ;;  %v593_v43 = vpop.f32.mrb[29].mxu1 }
 0x149   : > { %v498_v44 = vadd.f32 %v497_v42, %v1180_v51  ;;  %v594_v45 = vadd.f32 %v593_v43, %v1180_v51 }
 0x14a   : > { %616 = vst [vmem:[%s1185_s29 + $0xe0] sm:$0xff] %v496_v40  ;;  %632 = vst [vmem:[%s1185_s29 + $0x1e0] sm:$0xff] %v592_v41 }
 0x14b   : > { %795 = vst [vmem:[%s1185_s29 + $0xf0] sm:$0xff] %v498_v44  ;;  %811 = vst [vmem:[%s1185_s29 + $0x1f0] sm:$0xff] %v594_v45  ;;  %v501_v46 = vpop.f32.mrb[30].mxu0  ;;  %v597_v47 = vpop.f32.mrb[30].mxu1 }
 0x14c   : > { %v502_v48 = vadd.f32 %v501_v46, %v1178_v50  ;;  %v598_v49 = vadd.f32 %v597_v47, %v1178_v50  ;;  %v503_v52 = vpop.f32.mrb[31].mxu0  ;;  %v599_v53 = vpop.f32.mrb[31].mxu1 }
 0x14d   : > { %v504_v54 = vadd.f32 %v503_v52, %v1180_v51  ;;  %v600_v55 = vadd.f32 %v599_v53, %v1180_v51 }
 0x14e   : > { %617 = vst [vmem:[%s1185_s29 + $0xe8] sm:$0xff] %v502_v48  ;;  %633 = vst [vmem:[%s1185_s29 + $0x1e8] sm:$0xff] %v598_v49 }
 0x14f   : > { %796 = vst [vmem:[%s1185_s29 + $0xf8] sm:$0xff] %v504_v54  ;;  %812 = vst [vmem:[%s1185_s29 + $0x1f8] sm:$0xff] %v600_v55 }
 0x150 PF: > { %p13_p8 = scmp.ge.s32.totalorder %s982_s17, 4   ;;  %s1335_s12 = smov %s928_s13 }
 0x151   : > { %s1336_s13 = smov %s932_s14  ;;  %s1337_s14 = smov %s992_s20 }
 0x152   : > { %s1338_s15 = smov %s982_s17  ;;  %15 = sbr.rel (!%p13_p8) target bundleno = 3 (0x3), region = 73 }
 0x159   :  { %691 = vsyncpa [#allocation3], 1 }
 0x15a   :  { %693 = vsyncpa [#allocation3 + $0x1], 1 }

</bundles_post_ra>
